<compile_context>
chip_gen: v5e
topology: v5e:2x2
jax: 0.10.0
libtpu: 0.0.40
codegen_flags: <defaults>
</compile_context>

<pallas_src>
import functools

import jax
import jax.numpy as jnp
from jax import lax
from jax.experimental import pallas as pl
from jax.experimental.pallas import tpu as pltpu

LN_EPS = 1e-5      # PyTorch nn.LayerNorm default
AGG_EPS = 1e-8     # matches `mask.sum(...) + 1e-08` in the module


def _round_up(x, m):
    return (x + m - 1) // m * m


def _layernorm_padded(h, gamma, beta, n_true):
    """LayerNorm over the last dim where only the first `n_true` lanes are real.

    Requires: padded lanes of `h` are exactly 0 and gamma/beta are zero-padded,
    so padded lanes stay exactly 0 on the output (and the stats are exact).
    """
    mu = jnp.sum(h, axis=-1, keepdims=True) * (1.0 / n_true)
    lane = lax.broadcasted_iota(jnp.int32, h.shape, h.ndim - 1)
    d = jnp.where(lane < n_true, h - mu, 0.0)
    var = jnp.sum(d * d, axis=-1, keepdims=True) * (1.0 / n_true)
    return d * lax.rsqrt(var + LN_EPS) * gamma + beta


def fcn_w2v_kernel(idx_ref, emb_ref,
                   w1_ref, b1_ref, g1_ref, be1_ref,
                   w2_ref, b2_ref, g2_ref, be2_ref,
                   w3_ref, b3_ref,
                   out_ref, acc_ref, *, hidden):
    v = pl.program_id(1)                      # vocab-tile (reduction) axis
    n_v = pl.num_programs(1)

    bt, S = idx_ref.shape                     # batch tile, sequence length
    v_tile = emb_ref.shape[0]

    @pl.when(v == 0)
    def _init():
        acc_ref[...] = jnp.zeros_like(acc_ref)

    idx = idx_ref[...]                                        # (bt, S) int32
    # pad id is 0: remap to -1 so pads never match any vocab lane.
    idx_eff = jnp.where(idx == 0, -1, idx)

    # Global vocab ids covered by this V tile, one id per lane.
    lane_ids = lax.broadcasted_iota(jnp.int32, (bt, v_tile), 1) + v * v_tile

    # counts[b, j] = #occurrences of vocab id (v*v_tile + j) in row b (pads excluded).
    # Short unrolled loop over S: only one (bt, v_tile) accumulator is live.
    counts = jnp.zeros((bt, v_tile), jnp.float32)
    for s in range(S):
        counts = counts + (idx_eff[:, s:s + 1] == lane_ids).astype(jnp.float32)

    # Fused embedding lookup + sum-aggregation for this vocab tile (MXU).
    # counts are small integers -> exact cast if the table is stored in bf16.
    acc_ref[...] += jnp.dot(counts.astype(emb_ref.dtype), emb_ref[...],
                            preferred_element_type=jnp.float32)

    @pl.when(v == n_v - 1)
    def _finalize():
        # mean aggregation: divide by #non-pad tokens (+ eps), one reciprocal/row.
        denom = jnp.sum((idx != 0).astype(jnp.float32), axis=1,
                        keepdims=True) + AGG_EPS                      # (bt, 1)
        x = acc_ref[...] * pl.reciprocal(denom)                       # (bt, E_pad)

        # fc1 -> LayerNorm -> ReLU   (dropout == identity at inference)
        h = jnp.dot(x, w1_ref[...], preferred_element_type=jnp.float32) + b1_ref[...]
        h = jnp.maximum(_layernorm_padded(h, g1_ref[...], be1_ref[...], hidden), 0.0)
        # fc2 -> LayerNorm -> ReLU
        h = jnp.dot(h, w2_ref[...], preferred_element_type=jnp.float32) + b2_ref[...]
        h = jnp.maximum(_layernorm_padded(h, g2_ref[...], be2_ref[...], hidden), 0.0)
        # fc3
        out = jnp.dot(h, w3_ref[...], preferred_element_type=jnp.float32) + b3_ref[...]
        out_ref[...] = out.astype(out_ref.dtype)


def fcn_w2v_forward(idx, params, *, b_tile=None, v_tile=None):
    B, S = idx.shape
    V, E = params["emb"].shape
    H = params["w1"].shape[1]
    O = params["w3"].shape[1]

    # Lane-dense padded layout (multiples of 128 on the lane axis).
    E_pad = _round_up(E, 128)
    H_pad = _round_up(H, 128)
    O_pad = _round_up(O, 128)
    if b_tile is None:
        b_tile = min(128, _round_up(B, 8))
    B_pad = _round_up(B, b_tile)
    if v_tile is None:
        v_tile = min(512, _round_up(V, 128))
    V_pad = _round_up(V, v_tile)

    # Zero-pad everything (done here for the demo; pre-pad once in production).
    idx_p = jnp.pad(idx.astype(jnp.int32), ((0, B_pad - B), (0, 0)))   # pad rows = all-pad
    emb_p = jnp.pad(params["emb"], ((0, V_pad - V), (0, E_pad - E)))
    w1_p = jnp.pad(params["w1"], ((0, E_pad - E), (0, H_pad - H)))
    b1_p = jnp.pad(params["b1"], ((0, 0), (0, H_pad - H)))
    g1_p = jnp.pad(params["g1"], ((0, 0), (0, H_pad - H)))
    be1_p = jnp.pad(params["be1"], ((0, 0), (0, H_pad - H)))
    w2_p = jnp.pad(params["w2"], ((0, H_pad - H), (0, H_pad - H)))
    b2_p = jnp.pad(params["b2"], ((0, 0), (0, H_pad - H)))
    g2_p = jnp.pad(params["g2"], ((0, 0), (0, H_pad - H)))
    be2_p = jnp.pad(params["be2"], ((0, 0), (0, H_pad - H)))
    w3_p = jnp.pad(params["w3"], ((0, H_pad - H), (0, O_pad - O)))
    b3_p = jnp.pad(params["b3"], ((0, 0), (0, O_pad - O)))

    n_b = B_pad // b_tile
    n_v = V_pad // v_tile

    resident = pl.BlockSpec  # alias for readability below
    grid_spec = pltpu.PrefetchScalarGridSpec(
        num_scalar_prefetch=0,
        grid=(n_b, n_v),
        in_specs=[
            pl.BlockSpec((b_tile, S), lambda i, v: (i, 0)),          # idx (streamed/B)
            pl.BlockSpec((v_tile, E_pad), lambda i, v: (v, 0)),      # emb tile (streamed/V)
            resident((E_pad, H_pad), lambda i, v: (0, 0)),           # w1 (VMEM resident)
            resident((1, H_pad), lambda i, v: (0, 0)),               # b1
            resident((1, H_pad), lambda i, v: (0, 0)),               # g1
            resident((1, H_pad), lambda i, v: (0, 0)),               # be1
            resident((H_pad, H_pad), lambda i, v: (0, 0)),           # w2
            resident((1, H_pad), lambda i, v: (0, 0)),               # b2
            resident((1, H_pad), lambda i, v: (0, 0)),               # g2
            resident((1, H_pad), lambda i, v: (0, 0)),               # be2
            resident((H_pad, O_pad), lambda i, v: (0, 0)),           # w3
            resident((1, O_pad), lambda i, v: (0, 0)),               # b3
        ],
        out_specs=pl.BlockSpec((b_tile, O_pad), lambda i, v: (i, 0)),
        scratch_shapes=[pltpu.VMEM((b_tile, E_pad), jnp.float32)],   # x_sum accumulator
    )

    # Explicit VMEM budget: resident weights + 2x double-buffered streamed tiles
    # + scratch, with headroom; capped below v7x's 64 MiB physical VMEM.
    f32 = 4
    weights_bytes = (E_pad * H_pad + H_pad * H_pad + H_pad * O_pad
                     + 6 * H_pad + O_pad) * f32
    stream_bytes = 2 * (b_tile * S * 4
                        + v_tile * E_pad * emb_p.dtype.itemsize
                        + b_tile * O_pad * f32)
    scratch_bytes = b_tile * E_pad * f32
    vmem_budget = int((weights_bytes + stream_bytes + scratch_bytes) * 1.5) + (4 << 20)
    vmem_budget = min(max(vmem_budget, 8 << 20), 48 << 20)

    out_padded = pl.pallas_call(
        functools.partial(fcn_w2v_kernel, hidden=H),
        out_shape=jax.ShapeDtypeStruct((B_pad, O_pad), jnp.float32),
        grid_spec=grid_spec,
        compiler_params=pltpu.CompilerParams(
            dimension_semantics=("parallel", "arbitrary"),
            vmem_limit_bytes=vmem_budget),
    )(idx_p, emb_p,
      w1_p, b1_p, g1_p, be1_p,
      w2_p, b2_p, g2_p, be2_p,
      w3_p, b3_p)

    return out_padded[:B, :O]


def _ln_ref(h, gamma, beta):
    mu = jnp.mean(h, axis=-1, keepdims=True)
    var = jnp.mean((h - mu) ** 2, axis=-1, keepdims=True)
    return (h - mu) / jnp.sqrt(var + LN_EPS) * gamma + beta


def ref_forward(idx, p):
    """Pure-JAX reference mirroring the PyTorch forward (mean aggregator, eval)."""
    mask = (idx != 0).astype(jnp.float32)
    x = p["emb"][idx]                                    # (B, S, E)
    x = (x * mask[..., None]).sum(axis=1) / (mask.sum(axis=1, keepdims=True) + AGG_EPS)
    h = jnp.maximum(_ln_ref(x @ p["w1"] + p["b1"], p["g1"], p["be1"]), 0.0)
    h = jnp.maximum(_ln_ref(h @ p["w2"] + p["b2"], p["g2"], p["be2"]), 0.0)
    return h @ p["w3"] + p["b3"]


def init_params(key, vocab, emb_dim, hidden, out):
    ks = jax.random.split(key, 11)
    n = lambda k, s: jax.random.normal(k, s, jnp.float32) * 0.1
    return {
        "emb": n(ks[0], (vocab, emb_dim)),
        "w1":  n(ks[1], (emb_dim, hidden)),
        "b1":  n(ks[2], (1, hidden)),
        "g1":  1.0 + n(ks[3], (1, hidden)),
        "be1": n(ks[4], (1, hidden)),
        "w2":  n(ks[5], (hidden, hidden)),
        "b2":  n(ks[6], (1, hidden)),
        "g2":  1.0 + n(ks[7], (1, hidden)),
        "be2": n(ks[8], (1, hidden)),
        "w3":  n(ks[9], (hidden, out)),
        "b3":  n(ks[10], (1, out)),
    }


if __name__ == "__main__":
    B, S = 10, 8         # batch, sequence length
    V, E = 300, 32       # vocab size, embedding dim
    H, O = 32, 4         # hidden size, output size

    key = jax.random.PRNGKey(0)
    k_idx, k_par = jax.random.split(key)
    params = init_params(k_par, V, E, H, O)

    idx = jax.random.randint(k_idx, (B, S), 1, V, dtype=jnp.int32)
    idx = idx.at[:, -2:].set(0)          # trailing padding tokens (id == 0)
    idx = idx.at[1, :].set(0)            # one fully-padded row (exercises eps path)

    # b_tile=8 / v_tile=128 -> grid (2, 3): exercises the parallel batch axis and
    # the vocab-tiled reduction/accumulator path even at these small shapes.
    out = fcn_w2v_forward(idx, params, b_tile=8, v_tile=128)
    out = jax.block_until_ready(out)

    ref = ref_forward(idx, params)
    assert out.shape == (B, O)
    assert jnp.allclose(out, ref, atol=1e-4, rtol=1e-4), (out, ref)

    print("KERNEL_OK")
</pallas_src>

<mosaic_0001>
module attributes {stable_mosaic.version = 11 : i64} {
  func.func @fcn_w2v_kernel(%arg0: i32, %arg1: i32, %arg2: memref<8x8xi32, #tpu.memory_space<vmem>>, %arg3: memref<128x128xf32, #tpu.memory_space<vmem>>, %arg4: memref<128x128xf32, #tpu.memory_space<vmem>>, %arg5: memref<1x128xf32, #tpu.memory_space<vmem>>, %arg6: memref<1x128xf32, #tpu.memory_space<vmem>>, %arg7: memref<1x128xf32, #tpu.memory_space<vmem>>, %arg8: memref<128x128xf32, #tpu.memory_space<vmem>>, %arg9: memref<1x128xf32, #tpu.memory_space<vmem>>, %arg10: memref<1x128xf32, #tpu.memory_space<vmem>>, %arg11: memref<1x128xf32, #tpu.memory_space<vmem>>, %arg12: memref<128x128xf32, #tpu.memory_space<vmem>>, %arg13: memref<1x128xf32, #tpu.memory_space<vmem>>, %arg14: memref<8x128xf32, #tpu.memory_space<vmem>>, %arg15: memref<8x128xf32, #tpu.memory_space<vmem>>) attributes {dimension_semantics = [#tpu.dimension_semantics<parallel>, #tpu.dimension_semantics<arbitrary>], iteration_bounds = array<i64: 2, 3>, scalar_prefetch = 0 : i64, scratch_operands = 1 : i64, tpu.core_type = #tpu.core_type<tc>, window_params = [{transform_indices = @transform_0, window_bounds = array<i64: 8, 8>}, {transform_indices = @transform_1, window_bounds = array<i64: 128, 128>}, {pipeline_mode = #tpu.pipeline_mode<synchronous>, transform_indices = @transform_2, window_bounds = array<i64: 128, 128>}, {pipeline_mode = #tpu.pipeline_mode<synchronous>, transform_indices = @transform_3, window_bounds = array<i64: 1, 128>}, {pipeline_mode = #tpu.pipeline_mode<synchronous>, transform_indices = @transform_4, window_bounds = array<i64: 1, 128>}, {pipeline_mode = #tpu.pipeline_mode<synchronous>, transform_indices = @transform_5, window_bounds = array<i64: 1, 128>}, {pipeline_mode = #tpu.pipeline_mode<synchronous>, transform_indices = @transform_6, window_bounds = array<i64: 128, 128>}, {pipeline_mode = #tpu.pipeline_mode<synchronous>, transform_indices = @transform_7, window_bounds = array<i64: 1, 128>}, {pipeline_mode = #tpu.pipeline_mode<synchronous>, transform_indices = @transform_8, window_bounds = array<i64: 1, 128>}, {pipeline_mode = #tpu.pipeline_mode<synchronous>, transform_indices = @transform_9, window_bounds = array<i64: 1, 128>}, {pipeline_mode = #tpu.pipeline_mode<synchronous>, transform_indices = @transform_10, window_bounds = array<i64: 128, 128>}, {pipeline_mode = #tpu.pipeline_mode<synchronous>, transform_indices = @transform_11, window_bounds = array<i64: 1, 128>}, {transform_indices = @transform_12, window_bounds = array<i64: 8, 128>}]} {
    %c0_i32 = arith.constant 0 : i32
    %0 = arith.cmpi eq, %arg1, %c0_i32 : i32
    %1 = arith.extui %0 : i1 to i32
    %c0_i32_0 = arith.constant 0 : i32
    %2 = arith.cmpi ne, %1, %c0_i32_0 : i32
    scf.if %2 {
      %cst_11 = arith.constant 0.000000e+00 : f32
      %69 = vector.broadcast %cst_11 : f32 to vector<8x128xf32>
      %c0_12 = arith.constant 0 : index
      %c0_13 = arith.constant 0 : index
      %70 = vector.load %arg15[%c0_12, %c0_13] : memref<8x128xf32, #tpu.memory_space<vmem>>, vector<8x128xf32>
      tpu.vector_store %arg15[%c0_12, %c0_13], %69 {strides = array<i32>} : memref<8x128xf32, #tpu.memory_space<vmem>>, vector<8x128xf32>,
    } else {
    }
    %c0 = arith.constant 0 : index
    %c0_1 = arith.constant 0 : index
    %3 = vector.load %arg2[%c0, %c0_1] : memref<8x8xi32, #tpu.memory_space<vmem>>, vector<8x8xi32>
    %c0_i32_2 = arith.constant 0 : i32
    %4 = vector.broadcast %c0_i32_2 : i32 to vector<8x8xi32>
    %5 = arith.cmpi eq, %3, %4 : vector<8x8xi32>
    %c-1_i32 = arith.constant -1 : i32
    %6 = vector.broadcast %c-1_i32 : i32 to vector<8x8xi32>
    %7 = arith.select %5, %6, %3 : vector<8x8xi1>, vector<8x8xi32>
    %8 = tpu.iota {dimensions = array<i32: 1>} : vector<8x128xi32>
    %c128_i32 = arith.constant 128 : i32
    %9 = arith.muli %arg1, %c128_i32 : i32
    %10 = vector.broadcast %9 : i32 to vector<8x128xi32>
    %11 = arith.addi %8, %10 : vector<8x128xi32>
    %cst = arith.constant 0.000000e+00 : f32
    %12 = vector.broadcast %cst : f32 to vector<8x128xf32>
    %13 = vector.extract_strided_slice %7 {offsets = [0, 0], sizes = [8, 1], strides = [1, 1]} : vector<8x8xi32> to vector<8x1xi32>
    %14 = vector.broadcast %13 : vector<8x1xi32> to vector<8x128xi32>
    %15 = arith.cmpi eq, %14, %11 : vector<8x128xi32>
    %16 = arith.extui %15 : vector<8x128xi1> to vector<8x128xi32>
    %17 = arith.sitofp %16 : vector<8x128xi32> to vector<8x128xf32>
    %18 = arith.addf %12, %17 : vector<8x128xf32>
    %19 = vector.extract_strided_slice %7 {offsets = [0, 1], sizes = [8, 1], strides = [1, 1]} : vector<8x8xi32> to vector<8x1xi32>
    %20 = vector.broadcast %19 : vector<8x1xi32> to vector<8x128xi32>
    %21 = arith.cmpi eq, %20, %11 : vector<8x128xi32>
    %22 = arith.extui %21 : vector<8x128xi1> to vector<8x128xi32>
    %23 = arith.sitofp %22 : vector<8x128xi32> to vector<8x128xf32>
    %24 = arith.addf %18, %23 : vector<8x128xf32>
    %25 = vector.extract_strided_slice %7 {offsets = [0, 2], sizes = [8, 1], strides = [1, 1]} : vector<8x8xi32> to vector<8x1xi32>
    %26 = vector.broadcast %25 : vector<8x1xi32> to vector<8x128xi32>
    %27 = arith.cmpi eq, %26, %11 : vector<8x128xi32>
    %28 = arith.extui %27 : vector<8x128xi1> to vector<8x128xi32>
    %29 = arith.sitofp %28 : vector<8x128xi32> to vector<8x128xf32>
    %30 = arith.addf %24, %29 : vector<8x128xf32>
    %31 = vector.extract_strided_slice %7 {offsets = [0, 3], sizes = [8, 1], strides = [1, 1]} : vector<8x8xi32> to vector<8x1xi32>
    %32 = vector.broadcast %31 : vector<8x1xi32> to vector<8x128xi32>
    %33 = arith.cmpi eq, %32, %11 : vector<8x128xi32>
    %34 = arith.extui %33 : vector<8x128xi1> to vector<8x128xi32>
    %35 = arith.sitofp %34 : vector<8x128xi32> to vector<8x128xf32>
    %36 = arith.addf %30, %35 : vector<8x128xf32>
    %37 = vector.extract_strided_slice %7 {offsets = [0, 4], sizes = [8, 1], strides = [1, 1]} : vector<8x8xi32> to vector<8x1xi32>
    %38 = vector.broadcast %37 : vector<8x1xi32> to vector<8x128xi32>
    %39 = arith.cmpi eq, %38, %11 : vector<8x128xi32>
    %40 = arith.extui %39 : vector<8x128xi1> to vector<8x128xi32>
    %41 = arith.sitofp %40 : vector<8x128xi32> to vector<8x128xf32>
    %42 = arith.addf %36, %41 : vector<8x128xf32>
    %43 = vector.extract_strided_slice %7 {offsets = [0, 5], sizes = [8, 1], strides = [1, 1]} : vector<8x8xi32> to vector<8x1xi32>
    %44 = vector.broadcast %43 : vector<8x1xi32> to vector<8x128xi32>
    %45 = arith.cmpi eq, %44, %11 : vector<8x128xi32>
    %46 = arith.extui %45 : vector<8x128xi1> to vector<8x128xi32>
    %47 = arith.sitofp %46 : vector<8x128xi32> to vector<8x128xf32>
    %48 = arith.addf %42, %47 : vector<8x128xf32>
    %49 = vector.extract_strided_slice %7 {offsets = [0, 6], sizes = [8, 1], strides = [1, 1]} : vector<8x8xi32> to vector<8x1xi32>
    %50 = vector.broadcast %49 : vector<8x1xi32> to vector<8x128xi32>
    %51 = arith.cmpi eq, %50, %11 : vector<8x128xi32>
    %52 = arith.extui %51 : vector<8x128xi1> to vector<8x128xi32>
    %53 = arith.sitofp %52 : vector<8x128xi32> to vector<8x128xf32>
    %54 = arith.addf %48, %53 : vector<8x128xf32>
    %55 = vector.extract_strided_slice %7 {offsets = [0, 7], sizes = [8, 1], strides = [1, 1]} : vector<8x8xi32> to vector<8x1xi32>
    %56 = vector.broadcast %55 : vector<8x1xi32> to vector<8x128xi32>
    %57 = arith.cmpi eq, %56, %11 : vector<8x128xi32>
    %58 = arith.extui %57 : vector<8x128xi1> to vector<8x128xi32>
    %59 = arith.sitofp %58 : vector<8x128xi32> to vector<8x128xf32>
    %60 = arith.addf %54, %59 : vector<8x128xf32>
    %c0_3 = arith.constant 0 : index
    %c0_4 = arith.constant 0 : index
    %61 = vector.load %arg15[%c0_3, %c0_4] : memref<8x128xf32, #tpu.memory_space<vmem>>, vector<8x128xf32>
    %c0_5 = arith.constant 0 : index
    %c0_6 = arith.constant 0 : index
    %62 = vector.load %arg3[%c0_5, %c0_6] : memref<128x128xf32, #tpu.memory_space<vmem>>, vector<128x128xf32>
    %cst_7 = arith.constant dense<0.000000e+00> : vector<8x128xf32>
    %63 = tpu.matmul %60, %62, %cst_7 {dimension_numbers = #tpu.dot_dimension_numbers<[1], [0], [0], [1], [0, 0, 1, 1], [], []>} : vector<8x128xf32>, vector<128x128xf32>, vector<8x128xf32> -> vector<8x128xf32>
    %64 = arith.addf %61, %63 : vector<8x128xf32>
    %c0_8 = arith.constant 0 : index
    %c0_9 = arith.constant 0 : index
    %65 = vector.load %arg15[%c0_8, %c0_9] : memref<8x128xf32, #tpu.memory_space<vmem>>, vector<8x128xf32>
    tpu.vector_store %arg15[%c0_8, %c0_9], %64 {strides = array<i32>} : memref<8x128xf32, #tpu.memory_space<vmem>>, vector<8x128xf32>,
    %c2_i32 = arith.constant 2 : i32
    %66 = arith.cmpi eq, %arg1, %c2_i32 : i32
    %67 = arith.extui %66 : i1 to i32
    %c0_i32_10 = arith.constant 0 : i32
    %68 = arith.cmpi ne, %67, %c0_i32_10 : i32
    scf.if %68 {
      %c0_i32_11 = arith.constant 0 : i32
      %69 = vector.broadcast %c0_i32_11 : i32 to vector<8x8xi32>
      %70 = arith.cmpi ne, %3, %69 : vector<8x8xi32>
      %71 = arith.extui %70 : vector<8x8xi1> to vector<8x8xi32>
      %72 = arith.sitofp %71 : vector<8x8xi32> to vector<8x8xf32>
      %cst_12 = arith.constant dense<0.000000e+00> : vector<8xf32>
      %73 = vector.multi_reduction <add>, %72, %cst_12 [1] : vector<8x8xf32> to vector<8xf32>
      %74 = vector.shape_cast %73 : vector<8xf32> to vector<8x1xf32>
      %cst_13 = arith.constant 9.99999993E-9 : f32
      %75 = vector.broadcast %cst_13 : f32 to vector<8x1xf32>
      %76 = arith.addf %74, %75 : vector<8x1xf32>
      %c0_14 = arith.constant 0 : index
      %c0_15 = arith.constant 0 : index
      %77 = vector.load %arg15[%c0_14, %c0_15] : memref<8x128xf32, #tpu.memory_space<vmem>>, vector<8x128xf32>
      %78 = tpu.reciprocal %76 : vector<8x1xf32> -> vector<8x1xf32>
      %79 = vector.broadcast %78 : vector<8x1xf32> to vector<8x128xf32>
      %80 = arith.mulf %77, %79 : vector<8x128xf32>
      %c0_16 = arith.constant 0 : index
      %c0_17 = arith.constant 0 : index
      %81 = vector.load %arg4[%c0_16, %c0_17] : memref<128x128xf32, #tpu.memory_space<vmem>>, vector<128x128xf32>
      %cst_18 = arith.constant dense<0.000000e+00> : vector<8x128xf32>
      %82 = tpu.matmul %80, %81, %cst_18 {dimension_numbers = #tpu.dot_dimension_numbers<[1], [0], [0], [1], [0, 0, 1, 1], [], []>} : vector<8x128xf32>, vector<128x128xf32>, vector<8x128xf32> -> vector<8x128xf32>
      %c0_19 = arith.constant 0 : index
      %c0_20 = arith.constant 0 : index
      %83 = vector.load %arg5[%c0_19, %c0_20] : memref<1x128xf32, #tpu.memory_space<vmem>>, vector<1x128xf32>
      %84 = vector.broadcast %83 : vector<1x128xf32> to vector<8x128xf32>
      %85 = arith.addf %82, %84 : vector<8x128xf32>
      %c0_21 = arith.constant 0 : index
      %c0_22 = arith.constant 0 : index
      %86 = vector.load %arg6[%c0_21, %c0_22] : memref<1x128xf32, #tpu.memory_space<vmem>>, vector<1x128xf32>
      %c0_23 = arith.constant 0 : index
      %c0_24 = arith.constant 0 : index
      %87 = vector.load %arg7[%c0_23, %c0_24] : memref<1x128xf32, #tpu.memory_space<vmem>>, vector<1x128xf32>
      %cst_25 = arith.constant dense<0.000000e+00> : vector<8xf32>
      %88 = vector.multi_reduction <add>, %85, %cst_25 [1] : vector<8x128xf32> to vector<8xf32>
      %89 = vector.shape_cast %88 : vector<8xf32> to vector<8x1xf32>
      %cst_26 = arith.constant 3.125000e-02 : f32
      %90 = vector.broadcast %cst_26 : f32 to vector<8x1xf32>
      %91 = arith.mulf %89, %90 : vector<8x1xf32>
      %92 = tpu.iota {dimensions = array<i32: 1>} : vector<8x128xi32>
      %c32_i32 = arith.constant 32 : i32
      %93 = vector.broadcast %c32_i32 : i32 to vector<8x128xi32>
      %94 = arith.cmpi slt, %92, %93 : vector<8x128xi32>
      %95 = vector.broadcast %91 : vector<8x1xf32> to vector<8x128xf32>
      %96 = arith.subf %85, %95 : vector<8x128xf32>
      %cst_27 = arith.constant 0.000000e+00 : f32
      %97 = vector.broadcast %cst_27 : f32 to vector<8x128xf32>
      %98 = arith.select %94, %96, %97 : vector<8x128xi1>, vector<8x128xf32>
      %99 = arith.mulf %98, %98 : vector<8x128xf32>
      %cst_28 = arith.constant dense<0.000000e+00> : vector<8xf32>
      %100 = vector.multi_reduction <add>, %99, %cst_28 [1] : vector<8x128xf32> to vector<8xf32>
      %101 = vector.shape_cast %100 : vector<8xf32> to vector<8x1xf32>
      %cst_29 = arith.constant 3.125000e-02 : f32
      %102 = vector.broadcast %cst_29 : f32 to vector<8x1xf32>
      %103 = arith.mulf %101, %102 : vector<8x1xf32>
      %cst_30 = arith.constant 9.99999974E-6 : f32
      %104 = vector.broadcast %cst_30 : f32 to vector<8x1xf32>
      %105 = arith.addf %103, %104 : vector<8x1xf32>
      %106 = math.rsqrt %105 : vector<8x1xf32>
      %107 = vector.broadcast %106 : vector<8x1xf32> to vector<8x128xf32>
      %108 = arith.mulf %98, %107 : vector<8x128xf32>
      %109 = vector.broadcast %86 : vector<1x128xf32> to vector<8x128xf32>
      %110 = arith.mulf %108, %109 : vector<8x128xf32>
      %111 = vector.broadcast %87 : vector<1x128xf32> to vector<8x128xf32>
      %112 = arith.addf %110, %111 : vector<8x128xf32>
      %cst_31 = arith.constant 0.000000e+00 : f32
      %113 = vector.broadcast %cst_31 : f32 to vector<8x128xf32>
      %114 = arith.maximumf %112, %113 : vector<8x128xf32>
      %c0_32 = arith.constant 0 : index
      %c0_33 = arith.constant 0 : index
      %115 = vector.load %arg8[%c0_32, %c0_33] : memref<128x128xf32, #tpu.memory_space<vmem>>, vector<128x128xf32>
      %cst_34 = arith.constant dense<0.000000e+00> : vector<8x128xf32>
      %116 = tpu.matmul %114, %115, %cst_34 {dimension_numbers = #tpu.dot_dimension_numbers<[1], [0], [0], [1], [0, 0, 1, 1], [], []>} : vector<8x128xf32>, vector<128x128xf32>, vector<8x128xf32> -> vector<8x128xf32>
      %c0_35 = arith.constant 0 : index
      %c0_36 = arith.constant 0 : index
      %117 = vector.load %arg9[%c0_35, %c0_36] : memref<1x128xf32, #tpu.memory_space<vmem>>, vector<1x128xf32>
      %118 = vector.broadcast %117 : vector<1x128xf32> to vector<8x128xf32>
      %119 = arith.addf %116, %118 : vector<8x128xf32>
      %c0_37 = arith.constant 0 : index
      %c0_38 = arith.constant 0 : index
      %120 = vector.load %arg10[%c0_37, %c0_38] : memref<1x128xf32, #tpu.memory_space<vmem>>, vector<1x128xf32>
      %c0_39 = arith.constant 0 : index
      %c0_40 = arith.constant 0 : index
      %121 = vector.load %arg11[%c0_39, %c0_40] : memref<1x128xf32, #tpu.memory_space<vmem>>, vector<1x128xf32>
      %cst_41 = arith.constant dense<0.000000e+00> : vector<8xf32>
      %122 = vector.multi_reduction <add>, %119, %cst_41 [1] : vector<8x128xf32> to vector<8xf32>
      %123 = vector.shape_cast %122 : vector<8xf32> to vector<8x1xf32>
      %cst_42 = arith.constant 3.125000e-02 : f32
      %124 = vector.broadcast %cst_42 : f32 to vector<8x1xf32>
      %125 = arith.mulf %123, %124 : vector<8x1xf32>
      %126 = tpu.iota {dimensions = array<i32: 1>} : vector<8x128xi32>
      %c32_i32_43 = arith.constant 32 : i32
      %127 = vector.broadcast %c32_i32_43 : i32 to vector<8x128xi32>
      %128 = arith.cmpi slt, %126, %127 : vector<8x128xi32>
      %129 = vector.broadcast %125 : vector<8x1xf32> to vector<8x128xf32>
      %130 = arith.subf %119, %129 : vector<8x128xf32>
      %cst_44 = arith.constant 0.000000e+00 : f32
      %131 = vector.broadcast %cst_44 : f32 to vector<8x128xf32>
      %132 = arith.select %128, %130, %131 : vector<8x128xi1>, vector<8x128xf32>
      %133 = arith.mulf %132, %132 : vector<8x128xf32>
      %cst_45 = arith.constant dense<0.000000e+00> : vector<8xf32>
      %134 = vector.multi_reduction <add>, %133, %cst_45 [1] : vector<8x128xf32> to vector<8xf32>
      %135 = vector.shape_cast %134 : vector<8xf32> to vector<8x1xf32>
      %cst_46 = arith.constant 3.125000e-02 : f32
      %136 = vector.broadcast %cst_46 : f32 to vector<8x1xf32>
      %137 = arith.mulf %135, %136 : vector<8x1xf32>
      %cst_47 = arith.constant 9.99999974E-6 : f32
      %138 = vector.broadcast %cst_47 : f32 to vector<8x1xf32>
      %139 = arith.addf %137, %138 : vector<8x1xf32>
      %140 = math.rsqrt %139 : vector<8x1xf32>
      %141 = vector.broadcast %140 : vector<8x1xf32> to vector<8x128xf32>
      %142 = arith.mulf %132, %141 : vector<8x128xf32>
      %143 = vector.broadcast %120 : vector<1x128xf32> to vector<8x128xf32>
      %144 = arith.mulf %142, %143 : vector<8x128xf32>
      %145 = vector.broadcast %121 : vector<1x128xf32> to vector<8x128xf32>
      %146 = arith.addf %144, %145 : vector<8x128xf32>
      %cst_48 = arith.constant 0.000000e+00 : f32
      %147 = vector.broadcast %cst_48 : f32 to vector<8x128xf32>
      %148 = arith.maximumf %146, %147 : vector<8x128xf32>
      %c0_49 = arith.constant 0 : index
      %c0_50 = arith.constant 0 : index
      %149 = vector.load %arg12[%c0_49, %c0_50] : memref<128x128xf32, #tpu.memory_space<vmem>>, vector<128x128xf32>
      %cst_51 = arith.constant dense<0.000000e+00> : vector<8x128xf32>
      %150 = tpu.matmul %148, %149, %cst_51 {dimension_numbers = #tpu.dot_dimension_numbers<[1], [0], [0], [1], [0, 0, 1, 1], [], []>} : vector<8x128xf32>, vector<128x128xf32>, vector<8x128xf32> -> vector<8x128xf32>
      %c0_52 = arith.constant 0 : index
      %c0_53 = arith.constant 0 : index
      %151 = vector.load %arg13[%c0_52, %c0_53] : memref<1x128xf32, #tpu.memory_space<vmem>>, vector<1x128xf32>
      %152 = vector.broadcast %151 : vector<1x128xf32> to vector<8x128xf32>
      %153 = arith.addf %150, %152 : vector<8x128xf32>
      %c0_54 = arith.constant 0 : index
      %c0_55 = arith.constant 0 : index
      %154 = vector.load %arg14[%c0_54, %c0_55] : memref<8x128xf32, #tpu.memory_space<vmem>>, vector<8x128xf32>
      tpu.vector_store %arg14[%c0_54, %c0_55], %153 {strides = array<i32>} : memref<8x128xf32, #tpu.memory_space<vmem>>, vector<8x128xf32>,
    } else {
    }
    return
  }
  func.func @transform_0(%arg0: i32, %arg1: i32) -> (i32, i32) {
    %c0_i32 = arith.constant 0 : i32
    %c0_i32_0 = arith.constant 0 : i32
    return %arg0, %c0_i32 : i32, i32
  }
  func.func @transform_1(%arg0: i32, %arg1: i32) -> (i32, i32) {
    %c0_i32 = arith.constant 0 : i32
    %c0_i32_0 = arith.constant 0 : i32
    return %arg1, %c0_i32 : i32, i32
  }
  func.func @transform_2(%arg0: i32, %arg1: i32) -> (i32, i32) {
    %c0_i32 = arith.constant 0 : i32
    %c0_i32_0 = arith.constant 0 : i32
    %c0_i32_1 = arith.constant 0 : i32
    return %c0_i32, %c0_i32_0 : i32, i32
  }
  func.func @transform_3(%arg0: i32, %arg1: i32) -> (i32, i32) {
    %c0_i32 = arith.constant 0 : i32
    %c0_i32_0 = arith.constant 0 : i32
    %c0_i32_1 = arith.constant 0 : i32
    return %c0_i32, %c0_i32_0 : i32, i32
  }
  func.func @transform_4(%arg0: i32, %arg1: i32) -> (i32, i32) {
    %c0_i32 = arith.constant 0 : i32
    %c0_i32_0 = arith.constant 0 : i32
    %c0_i32_1 = arith.constant 0 : i32
    return %c0_i32, %c0_i32_0 : i32, i32
  }
  func.func @transform_5(%arg0: i32, %arg1: i32) -> (i32, i32) {
    %c0_i32 = arith.constant 0 : i32
    %c0_i32_0 = arith.constant 0 : i32
    %c0_i32_1 = arith.constant 0 : i32
    return %c0_i32, %c0_i32_0 : i32, i32
  }
  func.func @transform_6(%arg0: i32, %arg1: i32) -> (i32, i32) {
    %c0_i32 = arith.constant 0 : i32
    %c0_i32_0 = arith.constant 0 : i32
    %c0_i32_1 = arith.constant 0 : i32
    return %c0_i32, %c0_i32_0 : i32, i32
  }
  func.func @transform_7(%arg0: i32, %arg1: i32) -> (i32, i32) {
    %c0_i32 = arith.constant 0 : i32
    %c0_i32_0 = arith.constant 0 : i32
    %c0_i32_1 = arith.constant 0 : i32
    return %c0_i32, %c0_i32_0 : i32, i32
  }
  func.func @transform_8(%arg0: i32, %arg1: i32) -> (i32, i32) {
    %c0_i32 = arith.constant 0 : i32
    %c0_i32_0 = arith.constant 0 : i32
    %c0_i32_1 = arith.constant 0 : i32
    return %c0_i32, %c0_i32_0 : i32, i32
  }
  func.func @transform_9(%arg0: i32, %arg1: i32) -> (i32, i32) {
    %c0_i32 = arith.constant 0 : i32
    %c0_i32_0 = arith.constant 0 : i32
    %c0_i32_1 = arith.constant 0 : i32
    return %c0_i32, %c0_i32_0 : i32, i32
  }
  func.func @transform_10(%arg0: i32, %arg1: i32) -> (i32, i32) {
    %c0_i32 = arith.constant 0 : i32
    %c0_i32_0 = arith.constant 0 : i32
    %c0_i32_1 = arith.constant 0 : i32
    return %c0_i32, %c0_i32_0 : i32, i32
  }
  func.func @transform_11(%arg0: i32, %arg1: i32) -> (i32, i32) {
    %c0_i32 = arith.constant 0 : i32
    %c0_i32_0 = arith.constant 0 : i32
    %c0_i32_1 = arith.constant 0 : i32
    return %c0_i32, %c0_i32_0 : i32, i32
  }
  func.func @transform_12(%arg0: i32, %arg1: i32) -> (i32, i32) {
    %c0_i32 = arith.constant 0 : i32
    %c0_i32_0 = arith.constant 0 : i32
    return %arg0, %c0_i32 : i32, i32
  }
}

</mosaic_0001>

<bundles_post_ra>
// kernel: tpu_custom_call.1
= control target key start
LH: loop header
LB: loop body
LE: loop exit
PB: predicated region body
PF: predicated region fallthrough
CT: control target
= control target key end

     0   :  { %s1800_s0 = inlined_call_operand.vmem [shape: s32[16,8], index: 0, kind: input, shape index: {}]   ;;  %s1801_s1 = inlined_call_operand.hbm [shape: f32[384,128], index: 1, kind: input, shape index: {}]   ;;  %s1802_s2 = inlined_call_operand.hbm [shape: f32[128,128], index: 2, kind: input, shape index: {}]   ;;  %s1803_s3 = inlined_call_operand.vmem [shape: f32[1,128], index: 3, kind: input, shape index: {}]   ;;  %s1804_s4 = inlined_call_operand.vmem [shape: f32[1,128], index: 4, kind: input, shape index: {}]   ;;  %s1805_s5 = inlined_call_operand.vmem [shape: f32[1,128], index: 5, kind: input, shape index: {}]   ;;  %s1806_s6 = inlined_call_operand.hbm [shape: f32[128,128], index: 6, kind: input, shape index: {}]   ;;  %s1807_s7 = inlined_call_operand.vmem [shape: f32[1,128], index: 7, kind: input, shape index: {}]   ;;  %s1808_s8 = inlined_call_operand.vmem [shape: f32[1,128], index: 8, kind: input, shape index: {}]   ;;  %s1809_s9 = inlined_call_operand.vmem [shape: f32[1,128], index: 9, kind: input, shape index: {}]   ;;  %s1810_s10 = inlined_call_operand.hbm [shape: f32[128,128], index: 10, kind: input, shape index: {}]   ;;  %s1811_s11 = inlined_call_operand.vmem [shape: f32[1,128], index: 11, kind: input, shape index: {}]   ;;  %s1812_s12 = inlined_call_operand.hbm [shape: f32[16,128], index: 12, kind: output, shape index: {}]  }
   0x1   :  { %1823 = sst [smem:[#allocation22_spill]] %s1802_s2 }
   0x2   :  { %1824 = sst [smem:[#allocation23_spill]] %s1804_s4 }
   0x3   :  { %1825 = sst [smem:[#allocation24_spill]] %s1805_s5 }
   0x4   :  { %1826 = sst [smem:[#allocation25_spill]] %s1806_s6 }
   0x5   :  { %1827 = sst [smem:[#allocation26_spill]] %s1807_s7 }
   0x6   :  { %1828 = sst [smem:[#allocation27_spill]] %s1808_s8 }
   0x7   :  { %1829 = sst [smem:[#allocation28_spill]] %s1809_s9 }
   0x8   :  { %1830 = sst [smem:[#allocation29_spill]] %s1810_s10 }
   0x9   :  { %1831 = sst [smem:[#allocation30_spill]] %s1811_s11 }
   0xa   :  { %1832 = sst [smem:[#allocation31_spill]] %s1812_s12 }
   0xb   :  { %17 = vsyncpa [#allocation4], 0 }
   0xc   :  { %19 = vsyncpa [#allocation4 + $0x1], 0 }
   0xd   :  { %20 = vsyncpa [#allocation7], 0 }
   0xe   :  { %21 = vsyncpa [#allocation10], 0 }
   0xf   :  { %22 = vsyncpa [#allocation5], 0 }
  0x10   :  { %24 = vsyncpa [#allocation5 + $0x1], 0  ;;  %s1509_s21 = smov 0   ;;  %s1511_s22 = smov 0  }
  0x11   :  { %s1513_s23 = smov 0   ;;  %s1515_s24 = smov 0  }
  0x12   :  { %s1517_s25 = smov 0   ;;  %s1519_s26 = smov 0  }
  0x13   :  { %s1521_s27 = smov 0   ;;  %s1523_s28 = smov 0  }
  0x14   :  { %s1525_s29 = smov 0   ;;  %s1527_s30 = smov 0  }
  0x15   :  { %s1529_s13 = smov 0  }
  0x16 LB: > { %1833 = sst [smem:[#allocation16_spill]] %s1386_s21  ;;  %s974_s14 = sadd.s32 4294967295, %s1426_s13   ;;  %s1426_s13 = sphi %s1529_s13, %s30_s13   ;;  %s1422_s30 = sphi %s1527_s30, %s1863_s30   ;;  %s1418_s29 = sphi %s1525_s29, %s1871_s29   ;;  %s1414_s28 = sphi %s1523_s28, %s1861_s28   ;;  %s1410_s27 = sphi %s1521_s27, %s1870_s27   ;;  %s1406_s26 = sphi %s1519_s26, %s1869_s26   ;;  %s1402_s25 = sphi %s1517_s25, %s1868_s25   ;;  %s1398_s24 = sphi %s1515_s24, %s1867_s24   ;;  %s1394_s23 = sphi %s1513_s23, %s1866_s23   ;;  %s1390_s22 = sphi %s1511_s22, %s1865_s22   ;;  %s1386_s21 = sphi %s1509_s21, %s1864_s21  }
  0x17   : > { %1834 = sst [smem:[#allocation17_spill]] %s1422_s30  ;;  %s975_s15 = sadd.s32 4294967294, %s1426_s13  }
  0x18   : > { %p88_p0 = scmp.ne.s32.totalorder %s1402_s25, %s1398_s24  ;;  %p1565_p1 = scmp.eq.s32.totalorder %s974_s14, 0 }
  0x19   : > { %p321_p2 = scmp.ne.s32.totalorder %s1394_s23, %s1390_s22  ;;  %p322_p4 = scmp.eq.s32.totalorder %s974_s14, 5 }
  0x1a   : > { %p1573_p3 = por %p1565_p1, %p88_p0  ;;  %p327_p5 = scmp.ne.s32.totalorder %s1390_s22, %s1386_s21 }
  0x1b   : > { %p328_p6 = scmp.eq.s32.totalorder %s975_s15, 5  ;;  %p1579_p7 = por %p322_p4, %p321_p2 }
  0x1c   : > { %p976_p8 = scmp.ge.s32.totalorder %s1426_s13, 1  ;;  %p335_p10 = scmp.lt.s32.totalorder %s1426_s13, 7 }
  0x1d   : > { %s1837_s18 = scalar_select %p1579_p7, 1, 0 }
  0x1e   : > { %p1584_p9 = por %p328_p6, %p327_p5  ;;  %s1841_s2 = sld [smem:[#allocation22_spill]] }
  0x1f   : > { %1838 = sst [smem:[#allocation18_spill]] %s1837_s18  ;;  %p1592_p11 = pnand %p976_p8, %p335_p10 }
  0x20   : > { %s1839_s19 = scalar_select %p1584_p9, 1, 0 }
  0x21   : > { %p1024_p12 = pneg %p1592_p11  ;;  %s1428_s14 = smov [#allocation6]  }
  0x22   : > { %1840 = sst [smem:[#allocation19_spill]] %s1839_s19  ;;  %s348_s15 = sshll.u32 %s1428_s14, 4  ;;  %s349_s15 = int_to_ptr.vmem [resolvable:$true] %s348_s15 }
  0x23   : > { %p1600_p13 = pnand %p1024_p12, %p1565_p1  ;;  %s1844_s6 = sld [smem:[#allocation25_spill]] }
  0x24   : > { %s346_s12 = sshll.u32 %s1841_s2, 4  ;;  %s1818_s24 = smov 128   ;;  %s347_s12 = int_to_ptr.hbm [resolvable:$true] %s346_s12 }
  0x25   : > { %s1819_s2 = smov 8   ;;  %s1431_s14 = smov [#allocation8]  }
  0x26   : > { %1027 = dma.hbm_to_vmem [thread:$0]  (!%p1600_p13), %s347_s12, 2048, %s349_s15, [#allocation7], %s1818_s24, %s1818_s24, %s1819_s2  }
  0x27   : > { %s371_s18 = sshll.u32 %s1431_s14, 4  ;;  %s1845_s10 = sld [smem:[#allocation29_spill]]  ;;  %s372_s18 = int_to_ptr.vmem [resolvable:$true] %s371_s18 }
  0x28   : > { %s1432_s8 = smov [#allocation9]   ;;  %s39_s9 = sadd.s32 1, %s1418_s29 }
  0x29   : > { %s369_s20 = sshll.u32 %s1844_s6, 4  ;;  %s394_s7 = sshll.u32 %s1432_s8, 4  ;;  %s370_s20 = int_to_ptr.hbm [resolvable:$true] %s369_s20  ;;  %s395_s7 = int_to_ptr.vmem [resolvable:$true] %s394_s7 }
  0x2a   : > { %1030 = dma.hbm_to_vmem [thread:$0]  (!%p1600_p13), %s370_s20, 2048, %s372_s18, [#allocation7], %s1818_s24, %s1818_s24, %s1819_s2  }
  0x2b   : > { %p40_p0 = scmp.ge.s32.totalorder %s39_s9, 3  ;;  %s42_s12 = sadd.s32 1, %s1422_s30 }
  0x2c   : > { %s75_s15 = sadd.s32 1, %s1406_s26  ;;  %p82_p2 = scmp.ne.s32.totalorder %s1406_s26, %s1402_s25 }
  0x2d   : > { %s392_s6 = sshll.u32 %s1845_s10, 4  ;;  %s1873_s9 = smov (%p40_p0, %s39_s9), 0  ;;  %s393_s6 = int_to_ptr.hbm [resolvable:$true] %s392_s6 }
  0x2e   : > { %1033 = dma.hbm_to_vmem [thread:$0]  (!%p1600_p13), %s393_s6, 2048, %s395_s7, [#allocation10], %s1818_s24, %s1818_s24, %s1819_s2  }
  0x2f   : > { %1846 = sst [smem:[#allocation20_spill]] %s1873_s9  ;;  %s1875_s12 = smov (!%p40_p0, %s42_s12), %s1422_s30 }
  0x30   : > { %s72_s8 = ssub.s32 %s1418_s29, %s1873_s9  ;;  %p83_p4 = scmp.eq.s32.totalorder %s1426_s13, 0 }
  0x31   : > { %p44_p5 = scmp.ge.s32.totalorder %s1875_s12, 2  ;;  %p73_p6 = scmp.eq.s32.totalorder %s72_s8, 0 }
  0x32   : > { %s311_s21 = sadd.s32 1, %s1394_s23  ;;  %p1637_p8 = por %p83_p4, %p82_p2 }
  0x33   : > { %s1877_s12 = smov (%p44_p5, %s1875_s12), 0  ;;  %s418_s14 = sand.u32 1, %s1406_s26  }
  0x34   : > { %1848 = sst [smem:[#allocation21_spill]] %s1877_s12  ;;  %s308_s20 = ssub.s32 %s1422_s30, %s1877_s12 }
  0x35   : > { %s1644_s7 = scalar_select %p73_p6, %s1406_s26, %s75_s15  }
  0x36   : > { %p309_p10 = scmp.eq.s32.totalorder %s308_s20, 0  ;;  %p1045_p12 = scmp.lt.s32.totalorder %s1426_s13, 6 }
  0x37   : > { %s981_s18 = sshll.u32 %s418_s14, 7  ;;  %s1007_s19 = sshll.u32 %s1418_s29, 7 }
  0x38   : > { %s1652_s24 = scalar_select %p309_p10, %s1394_s23, %s311_s21  }
  0x39   : > { %s427_s10 = scalar_lea.hbm %s1801_s1, %s1007_s19  ;;  %s422_s5 = scalar_lea.vmem [#allocation3], %s981_s18 }
  0x3a   : > { %s428_s9 = sshll.u32 %s427_s10, 4  ;;  %s430_s4 = sshll.u32 %s422_s5, 4  ;;  %s429_s9 = int_to_ptr.hbm [resolvable:$true] %s428_s9  ;;  %s431_s4 = int_to_ptr.vmem [resolvable:$true] %s430_s4 }
  0x3b   : > { %p1035_p13 = pnand %p1045_p12, %p1637_p8  ;;  %s419_s15 = scalar_lea.sflag [#allocation4], %s418_s14 }
  0x3c   : > { %s1849_s12 = smov 8   ;;  %s1850_s30 = smov 128  }
  0x3d   : > { %1037 = dma.hbm_to_vmem [thread:$0]  (!%p1035_p13), %s429_s9, 2048, %s431_s4, %s419_s15, %s1850_s30, %s1850_s30, %s1849_s12  }
  0x3e   : > { %442 = sbr.rel (%p1592_p11) target bundleno = 1443 (0x5a3), region = 68  ;;  %s444_s21 = sand.u32 (!%p1592_p11), 1, %s1402_s25  }
  0x3f   : > { %s985_s2 = sshll.u32 (!%p1592_p11), %s444_s21, 7  ;;  %s445_s20 = scalar_lea.sflag (!%p1592_p11), [#allocation4], %s444_s21 }
  0x40   : > { %s1665_s10 = scalar_lea.vmem (!%p1592_p11), [#allocation3], %s985_s2 }
  0x43   : > { %1369 = dma.done.wait (%p1573_p3), %s445_s20, 2048  }
  0x44   : > { %1371 = vsyncadd (%p1573_p3), %s445_s20, 4294965248 }
  0x45   : > { %1373 = dma.done.wait (%p1565_p1), [#allocation7], 4096  }
  0x46   : > { %1375 = vsyncadd (%p1565_p1), [#allocation7], 4294963200 }
  0x47   : > { %1377 = dma.done.wait (%p1565_p1), [#allocation10], 2048  }
  0x48   : > { %1379 = vsyncadd (%p1565_p1), [#allocation10], 4294965248  ;;  %s506_s4 = sand.u32 1, %s1390_s22   ;;  %p509_p11 = scmp.lt.s32.totalorder %s1414_s28, 1 }
  0x49   : > { %s1683_s5 = sshll.u32 %s506_s4, 3  ;;  %p991_p3 = scmp.ne.s32.totalorder %s1410_s27, 0 }
  0x4a   : > { %s510_s11 = scalar_select %p509_p11, %s1414_s28, 1 }
  0x4b   : > { %s508_s6 = scalar_lea.vmem [#allocation11], %s1683_s5  ;;  %517 = sbr.rel (%p991_p3) target bundleno = 82 (0x52), region = 88 }
  0x4c   : > { %s990_s30 = sshll.u32 %s510_s11, 3 }
  0x4d   : > { %s512_s12 = scalar_lea.vmem %s1800_s0, %s990_s30 }
  0x50   : > { %v1433_v0 = vmov 0.0  }
  0x51   : > { %518 = vst [vmem:[#allocation2] sm:$0xff] %v1433_v0 }
  0x52 PF: > { %v1691_v1 = vld [vmem:[%s512_s12] sm:$0xff]  ;;  %v1434_v3 = vmov 0   ;;  %v1435_v4 = vmov 2   ;;  %v598_v5 = vld [vmem:[%s1665_s10 + $0x70] sm:$0xff]  ;;  %v1436_v7 = vmov 4   ;;  %v597_v8 = vld [vmem:[%s1665_s10 + $0x68] sm:$0xff]  ;;  %v522_v28 = vlaneseq }
  0x53   : > { %v599_v2 = vld [vmem:[%s1665_s10 + $0x78] sm:$0xff]  ;;  %1154 = vset.pattern.permute.xlu0 %v1434_v3  ;;  %1156 = vset.pattern.permute.xlu1 %v1435_v4  ;;  %vm520_vm0 = vcmp.eq.s32.totalorder %v1691_v1, 0  ;;  %v1437_v9 = vmov 1   ;;  %v1438_v10 = vmov 3   ;;  %v1439_v11 = vmov 5   ;;  %v596_v14 = vld [vmem:[%s1665_s10 + $0x60] sm:$0xff] }
  0x54   : > { %v521_v6 = vsel %vm520_vm0, 4294967295, %v1691_v1  ;;  %1158 = vset.pattern.permute.xlu2 %v1436_v7  ;;  %600 = vmatpush.msra.mxu0 %v599_v2  ;;  %v1440_v12 = vmov 6   ;;  %v1441_v13 = vmov 7   ;;  %v595_v15 = vld [vmem:[%s1665_s10 + $0x58] sm:$0xff]  ;;  %v594_v16 = vld [vmem:[%s1665_s10 + $0x50] sm:$0xff]  ;;  %v593_v17 = vld [vmem:[%s1665_s10 + $0x48] sm:$0xff] }
  0x55   : > { %528 = vperm.xlu0 %1154, %v521_v6   ;;  %542 = vperm.xlu1 %1156, %v521_v6   ;;  %v592_v18 = vld [vmem:[%s1665_s10 + $0x40] sm:$0xff]  ;;  %v591_v19 = vld [vmem:[%s1665_s10 + $0x38] sm:$0xff]  ;;  %v590_v20 = vld [vmem:[%s1665_s10 + $0x30] sm:$0xff]  ;;  %s992_s16 = sshll.u32 %s1410_s27, 7  ;;  %v1712_v29 = vand.u32 127, %v522_v28  ;;  %v1442_v37 = vmov 0.0  }
  0x56   : > { %556 = vperm.xlu2 %1158, %v521_v6   ;;  %601 = vmatpush.msra.mxu0 %v598_v5  ;;  %v589_v21 = vld [vmem:[%s1665_s10 + $0x28] sm:$0xff]  ;;  %v588_v22 = vld [vmem:[%s1665_s10 + $0x20] sm:$0xff]  ;;  %v587_v23 = vld [vmem:[%s1665_s10 + $0x18] sm:$0xff]  ;;  %v525_v32 = vstv %s992_s16  ;;  %p1001_p1 = scmp.ne.s32.totalorder %s1410_s27, 2 }
  0x57   : > { %v586_v24 = vld [vmem:[%s1665_s10 + $0x10] sm:$0xff]  ;;  %v585_v25 = vld [vmem:[%s1665_s10 + $0x8] sm:$0xff]  ;;  %v584_v26 = vld [vmem:[%s1665_s10] sm:$0xff]  ;;  %v526_v33 = vadd.s32 %v525_v32, %v1712_v29  ;;  %s1851_s8 = sld [smem:[#allocation23_spill]] (!%p1001_p1) }
  0x58   : > { %602 = vmatpush.msra.mxu0 %v597_v8  ;;  %v583_v55 = vld [vmem:[#allocation2] sm:$0xff]  ;;  %s1852_s2 = sld [smem:[#allocation24_spill]] (!%p1001_p1) }
  0x59   : > { %s1853_s11 = sld [smem:[#allocation26_spill]] (!%p1001_p1) }
  0x5a   : > { %603 = vmatpush.msra.mxu0 %v596_v14  ;;  %s1854_s9 = sld [smem:[#allocation27_spill]] (!%p1001_p1) }
  0x5b   : > { %s1855_s27 = sld [smem:[#allocation28_spill]] (!%p1001_p1) }
  0x5c   : > { %604 = vmatpush.msra.mxu0 %v595_v15  ;;  %s1856_s19 = sld [smem:[#allocation30_spill]] (!%p1001_p1) }
  0x5d   : > { %1155 = vset.pattern.permute.xlu0 %v1437_v9  ;;  %1157 = vset.pattern.permute.xlu1 %v1438_v10 }
  0x5e   : > { %535 = vperm.xlu0 %1155, %v521_v6   ;;  %549 = vperm.xlu1 %1157, %v521_v6  }
  0x5f   : > { %1159 = vset.pattern.permute.xlu2 %v1439_v11  ;;  %605 = vmatpush.msra.mxu0 %v594_v16 }
  0x60   : > { %563 = vperm.xlu2 %1159, %v521_v6  }
  0x61   : > { %606 = vmatpush.msra.mxu0 %v593_v17 }
  0x63   : > { %607 = vmatpush.msra.mxu0 %v592_v18 }
  0x65   : > { %608 = vmatpush.msra.mxu0 %v591_v19 }
  0x66   : > { %1160 = vset.pattern.permute.xlu1 %v1440_v12  ;;  %1162 = vset.pattern.permute.xlu0 %v1441_v13 }
  0x67   : > { %570 = vperm.xlu1 %1160, %v521_v6   ;;  %609 = vmatpush.msra.mxu0 %v590_v20 }
  0x68   : > { %1161 = vset.pattern.permute.xlu2 %v1441_v13 }
  0x69   : > { %577 = vperm.xlu2 %1161, %v521_v6   ;;  %610 = vmatpush.msra.mxu0 %v589_v21 }
  0x6b   : > { %611 = vmatpush.msra.mxu0 %v588_v22 }
  0x6d   : > { %612 = vmatpush.msra.mxu0 %v587_v23 }
  0x6f   : > { %613 = vmatpush.msra.mxu0 %v586_v24 }
  0x71   : > { %614 = vmatpush.msra.mxu0 %v585_v25 }
  0x73   : > { %615 = vmatpush.msra.mxu0 %v584_v26 }
  0xb0   : > { %v557_v27 = vpop.permute.xlu2 %556 }
  0xb1   : > { %vm558_vm5 = vcmp.eq.s32.totalorder %v557_v27, %v526_v33 }
  0xb2   : > { %v997_v46 = vsel %vm558_vm5, 1.0, %v1442_v37 }
  0xba   : > { %v564_v34 = vpop.permute.xlu2 %563 }
  0xbb   : > { %vm565_vm6 = vcmp.eq.s32.totalorder %v564_v34, %v526_v33 }
  0xbc   : > { %v998_v49 = vsel %vm565_vm6, 1.0, %v1442_v37 }
  0xc3   : > { %v578_v44 = vpop.permute.xlu2 %577 }
  0xc4   : > { %vm579_vm7 = vcmp.eq.s32.totalorder %v578_v44, %v526_v33 }
  0xc5   : > { %v1000_v52 = vsel %vm579_vm7, 1.0, %v1442_v37 }
  0xc7   : > { %v529_v30 = vpop.permute.xlu0 %528  ;;  %v543_v31 = vpop.permute.xlu1 %542 }
  0xc8   : > { %vm530_vm1 = vcmp.eq.s32.totalorder %v529_v30, %v526_v33  ;;  %vm544_vm2 = vcmp.eq.s32.totalorder %v543_v31, %v526_v33 }
  0xc9   : > { %v993_v38 = vsel %vm530_vm1, 1.0, %v1442_v37  ;;  %v995_v41 = vsel %vm544_vm2, 1.0, %v1442_v37 }
  0xd0   : > { %v536_v35 = vpop.permute.xlu0 %535  ;;  %v550_v36 = vpop.permute.xlu1 %549 }
  0xd1   : > { %vm537_vm3 = vcmp.eq.s32.totalorder %v536_v35, %v526_v33  ;;  %vm551_vm4 = vcmp.eq.s32.totalorder %v550_v36, %v526_v33 }
  0xd2   : > { %v994_v39 = vsel %vm537_vm3, 1.0, %v1442_v37  ;;  %v996_v43 = vsel %vm551_vm4, 1.0, %v1442_v37 }
  0xd3   : > { %v540_v40 = vadd.f32 %v994_v39, %v993_v38 }
  0xd5   : > { %v547_v42 = vadd.f32 %v995_v41, %v540_v40 }
  0xd7   : > { %v554_v45 = vadd.f32 %v996_v43, %v547_v42 }
  0xd9   : > { %v561_v47 = vadd.f32 %v997_v46, %v554_v45  ;;  %v571_v48 = vpop.permute.xlu1 %570 }
  0xda   : > { %vm572_vm8 = vcmp.eq.s32.totalorder %v571_v48, %v526_v33 }
  0xdb   : > { %v568_v50 = vadd.f32 %v998_v49, %v561_v47  ;;  %v999_v51 = vsel %vm572_vm8, 1.0, %v1442_v37 }
  0xdd   : > { %v575_v53 = vadd.f32 %v999_v51, %v568_v50 }
  0xdf   : > { %v582_v54 = vadd.f32 %v1000_v52, %v575_v53 }
  0xe1   : > { %616 = vmatmul.f32.vlgmr.msra.gmra.mxu0 %v582_v54 }
 0x15d   : > { %625 = sbr.rel (%p1001_p1) target bundleno = 1423 (0x58f), region = 92 }
 0x15e   : > { %v617_v56 = vpop.f32.mrf.mxu0 }
 0x15f   : > { %v620_v57 = vadd.f32 %v617_v56, %v583_v55 }
 0x161   : > { %621 = vst [vmem:[#allocation2] sm:$0xff] %v620_v57 }
 0x162   : > { %vm626_vm9 = vcmp.ne.s32.totalorder %v1691_v1, 0  ;;  %vm629_vm10 = vcmask 64512   ;;  %v665_v58 = vld [vmem:[#allocation6 + $0x78] sm:$0xff]  ;;  %v664_v59 = vld [vmem:[#allocation6 + $0x70] sm:$0xff]  ;;  %v1443_v60 = vmov 0.0   ;;  %v663_v63 = vld [vmem:[#allocation6 + $0x68] sm:$0xff] }
 0x163   : > { %v1002_v61 = vsel %vm626_vm9, 1.0, %v1443_v60  ;;  %670 = vmatpush.msra.mxu0 %v665_v58  ;;  %v662_v0 = vld [vmem:[#allocation6 + $0x60] sm:$0xff]  ;;  %v661_v2 = vld [vmem:[#allocation6 + $0x58] sm:$0xff]  ;;  %v660_v3 = vld [vmem:[#allocation6 + $0x50] sm:$0xff]  ;;  %vm695_vm15 = vcmp.lt.s32.totalorder %v1712_v29, 32 }
 0x164   : > { %v630_v62 = vsel %vm629_vm10, %v1002_v61, 0.0  ;;  %v659_v4 = vld [vmem:[#allocation6 + $0x48] sm:$0xff]  ;;  %v658_v1 = vld [vmem:[#allocation6 + $0x40] sm:$0xff]  ;;  %v657_v5 = vld [vmem:[#allocation6 + $0x38] sm:$0xff] }
 0x165   : > { %631 = vadd.xlane.f32.xlu0 %v630_v62  ;;  %671 = vmatpush.msra.mxu0 %v664_v59  ;;  %v656_v6 = vld [vmem:[#allocation6 + $0x30] sm:$0xff]  ;;  %v655_v7 = vld [vmem:[#allocation6 + $0x28] sm:$0xff]  ;;  %v654_v8 = vld [vmem:[#allocation6 + $0x20] sm:$0xff] }
 0x166   : > { %v653_v9 = vld [vmem:[#allocation6 + $0x18] sm:$0xff]  ;;  %v652_v10 = vld [vmem:[#allocation6 + $0x10] sm:$0xff]  ;;  %v651_v11 = vld [vmem:[#allocation6 + $0x8] sm:$0xff] }
 0x167   : > { %672 = vmatpush.msra.mxu0 %v663_v63  ;;  %v650_v12 = vld [vmem:[#allocation6] sm:$0xff]  ;;  %v1163_v27 = vld [vmem:[%s1803_s3] ss:$0 sm:$0xff]  ;;  %v737_v37 = vld [vmem:[#allocation8 + $0x70] sm:$0xff] }
 0x168   : > { %v634_v22 = vld [vmem:[#allocation2] sm:$0xff]  ;;  %v736_v38 = vld [vmem:[#allocation8 + $0x68] sm:$0xff]  ;;  %v735_v39 = vld [vmem:[#allocation8 + $0x60] sm:$0xff] }
 0x169   : > { %673 = vmatpush.msra.mxu0 %v662_v0  ;;  %v738_v31 = vld [vmem:[#allocation8 + $0x78] sm:$0xff]  ;;  %v733_v41 = vld [vmem:[#allocation8 + $0x50] sm:$0xff]  ;;  %v732_v42 = vld [vmem:[#allocation8 + $0x48] sm:$0xff] }
 0x16a   : > { %743 = vmatpush.msra.mxu1 %v738_v31  ;;  %v734_v40 = vld [vmem:[#allocation8 + $0x58] sm:$0xff]  ;;  %v731_v43 = vld [vmem:[#allocation8 + $0x40] sm:$0xff]  ;;  %v729_v45 = vld [vmem:[#allocation8 + $0x30] sm:$0xff] }
 0x16b   : > { %674 = vmatpush.msra.mxu0 %v661_v2  ;;  %v730_v44 = vld [vmem:[#allocation8 + $0x38] sm:$0xff]  ;;  %v728_v46 = vld [vmem:[#allocation8 + $0x28] sm:$0xff]  ;;  %v727_v47 = vld [vmem:[#allocation8 + $0x20] sm:$0xff] }
 0x16c   : > { %744 = vmatpush.msra.mxu1 %v737_v37  ;;  %v726_v48 = vld [vmem:[#allocation8 + $0x18] sm:$0xff]  ;;  %v725_v49 = vld [vmem:[#allocation8 + $0x10] sm:$0xff]  ;;  %v724_v50 = vld [vmem:[#allocation8 + $0x8] sm:$0xff] }
 0x16d   : > { %675 = vmatpush.msra.mxu0 %v660_v3  ;;  %v723_v51 = vld [vmem:[#allocation8] sm:$0xff]  ;;  %v1164_v61 = vld [vmem:[%s1851_s8] ss:$0 sm:$0xff]  ;;  %v801_v29 = vld [vmem:[#allocation9 + $0x30] sm:$0xff] }
 0x16e   : > { %745 = vmatpush.msra.mxu1 %v736_v38  ;;  %v1165_v0 = vld [vmem:[%s1852_s2] ss:$0 sm:$0xff] }
 0x16f   : > { %676 = vmatpush.msra.mxu0 %v659_v4  ;;  %v1167_v37 = vld [vmem:[%s1854_s9] ss:$0 sm:$0xff] }
 0x170   : > { %746 = vmatpush.msra.mxu1 %v735_v39 }
 0x171   : > { %677 = vmatpush.msra.mxu0 %v658_v1  ;;  %v1166_v1 = vld [vmem:[%s1853_s11] ss:$0 sm:$0xff] }
 0x172   : > { %747 = vmatpush.msra.mxu1 %v734_v40  ;;  %v1168_v40 = vld [vmem:[%s1855_s27] ss:$0 sm:$0xff] }
 0x173   : > { %678 = vmatpush.msra.mxu0 %v657_v5 }
 0x174   : > { %748 = vmatpush.msra.mxu1 %v733_v41 }
 0x175   : > { %679 = vmatpush.msra.mxu0 %v656_v6 }
 0x176   : > { %749 = vmatpush.msra.mxu1 %v732_v42 }
 0x177   : > { %680 = vmatpush.msra.mxu0 %v655_v7  ;;  %v810_v7 = vld [vmem:[#allocation9 + $0x78] sm:$0xff] }
 0x178   : > { %750 = vmatpush.msra.mxu1 %v731_v43  ;;  %815 = vmatpush.msra.mxu2 %v810_v7 }
 0x179   : > { %681 = vmatpush.msra.mxu0 %v654_v8 }
 0x17a   : > { %751 = vmatpush.msra.mxu1 %v730_v44  ;;  %v1169_v44 = vld [vmem:[%s1856_s19] ss:$0 sm:$0xff] }
 0x17b   : > { %682 = vmatpush.msra.mxu0 %v653_v9 }
 0x17c   : > { %752 = vmatpush.msra.mxu1 %v729_v45 }
 0x17d   : > { %683 = vmatpush.msra.mxu0 %v652_v10 }
 0x17e   : > { %753 = vmatpush.msra.mxu1 %v728_v46 }
 0x17f   : > { %684 = vmatpush.msra.mxu0 %v651_v11 }
 0x180   : > { %754 = vmatpush.msra.mxu1 %v727_v47 }
 0x181   : > { %685 = vmatpush.msra.mxu0 %v650_v12 }
 0x182   : > { %755 = vmatpush.msra.mxu1 %v726_v48 }
 0x184   : > { %756 = vmatpush.msra.mxu1 %v725_v49 }
 0x186   : > { %757 = vmatpush.msra.mxu1 %v724_v50 }
 0x188   : > { %758 = vmatpush.msra.mxu1 %v723_v51 }
 0x1d8   : > { %v632_v13 = vpop.xlane.xlu0 %631 }
 0x1d9   : > { %v633_v14 = vadd.f32 1e-08, %v632_v13  ;;  %v809_v13 = vld [vmem:[#allocation9 + $0x70] sm:$0xff] }
 0x1da   : > { %816 = vmatpush.msra.mxu2 %v809_v13 }
 0x1db   : > { %1170 = vrcp.f32 %v633_v14  ;;  %v646_v18 = vand.u32 2147483648, %v633_v14  ;;  %v644_v20 = vand.u32 2147483647, %v633_v14  ;;  %vm640_vm12 = vweird.f32 %v633_v14 }
 0x1dd   : > { %v647_v23 = vor.u32 1.1754944e-38, %v646_v18  ;;  %vm645_vm14 = vcmp.eq.f32.partialorder %v644_v20, 8.507059e+37  ;;  %v804_v18 = vld [vmem:[#allocation9 + $0x48] sm:$0xff]  ;;  %v802_v20 = vld [vmem:[#allocation9 + $0x38] sm:$0xff] }
 0x1e1   : > { %v1171_v15 = vpop.eup %1170 }
 0x1e2   : > { %v636_v16 = vmul.f32 %v1171_v15, %v633_v14  ;;  %vm641_vm11 = vweird.f32 %v1171_v15  ;;  %v808_v14 = vld [vmem:[#allocation9 + $0x68] sm:$0xff] }
 0x1e3   : > { %vm642_vm13 = vmor %vm640_vm12, %vm641_vm11  ;;  %817 = vmatpush.msra.mxu2 %v808_v14 }
 0x1e4   : > { %v637_v17 = vsub.f32 1.0, %v636_v16  ;;  %v806_v16 = vld [vmem:[#allocation9 + $0x58] sm:$0xff] }
 0x1e6   : > { %v638_v19 = vmul.f32 %v1171_v15, %v637_v17  ;;  %v805_v17 = vld [vmem:[#allocation9 + $0x50] sm:$0xff] }
 0x1e8   : > { %v639_v21 = vadd.f32 %v1171_v15, %v638_v19  ;;  %v803_v19 = vld [vmem:[#allocation9 + $0x40] sm:$0xff] }
 0x1ea   : > { %v643_v24 = vsel %vm642_vm13, %v1171_v15, %v639_v21  ;;  %v807_v15 = vld [vmem:[#allocation9 + $0x60] sm:$0xff]  ;;  %v800_v21 = vld [vmem:[#allocation9 + $0x28] sm:$0xff] }
 0x1eb   : > { %v648_v25 = vsel %vm645_vm14, %v647_v23, %v643_v24  ;;  %818 = vmatpush.msra.mxu2 %v807_v15  ;;  %v798_v23 = vld [vmem:[#allocation9 + $0x18] sm:$0xff]  ;;  %v797_v24 = vld [vmem:[#allocation9 + $0x10] sm:$0xff] }
 0x1ec   : > { %v649_v26 = vmul.f32 %v648_v25, %v634_v22  ;;  %v799_v22 = vld [vmem:[#allocation9 + $0x20] sm:$0xff]  ;;  %v796_v25 = vld [vmem:[#allocation9 + $0x8] sm:$0xff] }
 0x1ed   : > { %819 = vmatpush.msra.mxu2 %v806_v16 }
 0x1ee   : > { %686 = vmatmul.f32.vlgmr.msra.gmra.mxu0 %v649_v26  ;;  %v795_v26 = vld [vmem:[#allocation9] sm:$0xff] }
 0x1ef   : > { %820 = vmatpush.msra.mxu2 %v805_v17 }
 0x1f1   : > { %821 = vmatpush.msra.mxu2 %v804_v18 }
 0x1f3   : > { %822 = vmatpush.msra.mxu2 %v803_v19 }
 0x1f5   : > { %823 = vmatpush.msra.mxu2 %v802_v20 }
 0x1f7   : > { %824 = vmatpush.msra.mxu2 %v801_v29 }
 0x1f9   : > { %825 = vmatpush.msra.mxu2 %v800_v21 }
 0x1fb   : > { %826 = vmatpush.msra.mxu2 %v799_v22 }
 0x1fd   : > { %827 = vmatpush.msra.mxu2 %v798_v23 }
 0x1ff   : > { %828 = vmatpush.msra.mxu2 %v797_v24 }
 0x201   : > { %829 = vmatpush.msra.mxu2 %v796_v25 }
 0x203   : > { %830 = vmatpush.msra.mxu2 %v795_v26 }
 0x26b   : > { %v687_v28 = vpop.f32.mrf.mxu0 }
 0x26c   : > { %v688_v30 = vadd.f32 %v1163_v27, %v687_v28 }
 0x26e   : > { %692 = vadd.xlane.f32.xlu0 %v688_v30 }
 0x2e1   : > { %v693_v32 = vpop.xlane.xlu0 %692 }
 0x2e2   : > { %v694_v33 = vmul.f32 0.03125, %v693_v32 }
 0x2e4   : > { %v696_v34 = vsub.f32 %v688_v30, %v694_v33 }
 0x2e6   : > { %v697_v35 = vsel %vm695_vm15, %v696_v34, 0.0 }
 0x2e7   : > { %v698_v36 = vmul.f32 %v697_v35, %v697_v35 }
 0x2e9   : > { %699 = vadd.xlane.f32.xlu1 %v698_v36 }
 0x35c   : > { %v700_v52 = vpop.xlane.xlu1 %699 }
 0x35d   : > { %v701_v53 = vmul.f32 0.03125, %v700_v52 }
 0x35f   : > { %v702_v54 = vadd.f32 1e-05, %v701_v53 }
 0x361   : > { %1172 = vrsqrt.f32 %v702_v54  ;;  %vm709_vm1 = vweird.f32 %v702_v54 }
 0x367   : > { %v1173_v55 = vpop.eup %1172 }
 0x368   : > { %v704_v56 = vmul.f32 %v1173_v55, %v702_v54  ;;  %vm710_vm0 = vweird.f32 %v1173_v55 }
 0x369   : > { %vm711_vm2 = vmor %vm709_vm1, %vm710_vm0 }
 0x36a   : > { %v705_v57 = vmul.f32 %v1173_v55, %v704_v56 }
 0x36c   : > { %v706_v58 = vmul.f32 0.5, %v705_v57 }
 0x36e   : > { %v707_v59 = vsub.f32 1.5, %v706_v58 }
 0x370   : > { %v708_v60 = vmul.f32 %v1173_v55, %v707_v59 }
 0x372   : > { %v712_v62 = vsel %vm711_vm2, %v1173_v55, %v708_v60 }
 0x373   : > { %v713_v63 = vmul.f32 %v712_v62, %v697_v35 }
 0x375   : > { %v717_v2 = vmul.f32 %v1164_v61, %v713_v63 }
 0x377   : > { %v721_v3 = vadd.f32 %v1165_v0, %v717_v2 }
 0x379   : > { %v722_v4 = vmax.f32 %v721_v3, 0.0 }
 0x37b   : > { %759 = vmatmul.f32.vlgmr.msra.gmra.mxu1 %v722_v4 }
 0x3f8   : > { %v760_v5 = vpop.f32.mrf.mxu1 }
 0x3f9   : > { %v761_v6 = vadd.f32 %v1166_v1, %v760_v5 }
 0x3fb   : > { %765 = vadd.xlane.f32.xlu1 %v761_v6 }
 0x46e   : > { %v766_v8 = vpop.xlane.xlu1 %765 }
 0x46f   : > { %v767_v9 = vmul.f32 0.03125, %v766_v8 }
 0x471   : > { %v768_v10 = vsub.f32 %v761_v6, %v767_v9 }
 0x473   : > { %v769_v11 = vsel %vm695_vm15, %v768_v10, 0.0 }
 0x474   : > { %v770_v12 = vmul.f32 %v769_v11, %v769_v11 }
 0x476   : > { %771 = vadd.xlane.f32.xlu2 %v770_v12 }
 0x4e9   : > { %v772_v27 = vpop.xlane.xlu2 %771 }
 0x4ea   : > { %v773_v28 = vmul.f32 0.03125, %v772_v27 }
 0x4ec   : > { %v774_v30 = vadd.f32 1e-05, %v773_v28 }
 0x4ee   : > { %1174 = vrsqrt.f32 %v774_v30  ;;  %vm781_vm4 = vweird.f32 %v774_v30 }
 0x4f4   : > { %v1175_v31 = vpop.eup %1174 }
 0x4f5   : > { %v776_v32 = vmul.f32 %v1175_v31, %v774_v30  ;;  %vm782_vm3 = vweird.f32 %v1175_v31 }
 0x4f6   : > { %vm783_vm5 = vmor %vm781_vm4, %vm782_vm3 }
 0x4f7   : > { %v777_v33 = vmul.f32 %v1175_v31, %v776_v32 }
 0x4f9   : > { %v778_v34 = vmul.f32 0.5, %v777_v33 }
 0x4fb   : > { %v779_v35 = vsub.f32 1.5, %v778_v34 }
 0x4fd   : > { %v780_v36 = vmul.f32 %v1175_v31, %v779_v35 }
 0x4ff   : > { %v784_v38 = vsel %vm783_vm5, %v1175_v31, %v780_v36 }
 0x500   : > { %v785_v39 = vmul.f32 %v784_v38, %v769_v11 }
 0x502   : > { %v789_v41 = vmul.f32 %v1167_v37, %v785_v39 }
 0x504   : > { %v793_v42 = vadd.f32 %v1168_v40, %v789_v41 }
 0x506   : > { %v794_v43 = vmax.f32 %v793_v42, 0.0 }
 0x508   : > { %831 = vmatmul.f32.vlgmr.msra.gmra.mxu2 %v794_v43 }
 0x58b   : > { %v832_v45 = vpop.f32.mrf.mxu2 }
 0x58c   : > { %v833_v46 = vadd.f32 %v1169_v44, %v832_v45 }
 0x58e   : > { %835 = vst [vmem:[%s508_s6] sm:$0xff] %v833_v46 }
 0x58f PF: > { %s1004_s15 = sshll.u32 %s1414_s28, 3  ;;  %s1858_s20 = sld [smem:[#allocation31_spill]] }
 0x590   : > { %s849_s11 = sshll.u32 %s508_s6, 4  ;;  %s837_s17 = scalar_lea.sflag [#allocation5], %s506_s4  ;;  %s850_s11 = int_to_ptr.vmem [resolvable:$true] %s849_s11 }
 0x595   : > { %s847_s10 = scalar_lea.hbm %s1858_s20, %s1004_s15  ;;  %s1316_s27 = scalar_lea.hbm %s1858_s20, 16 }
 0x596   : > { %s851_s30 = sshll.u32 %s847_s10, 4  ;;  %s852_s30 = int_to_ptr.hbm [resolvable:$true] %s851_s30 }
 0x597   : > { %s1310_s9 = sshra.s32 %s852_s30, 4  ;;  %s1311_s9 = int_to_ptr.hbm [resolvable:$true] %s1310_s9 }
 0x598   : > { %s1312_s12 = scalar_lea.hbm %s1311_s9, 8  ;;  %p1317_p5 = scmp.lt.s32.totalorder %s1311_s9, %s1858_s20 }
 0x599   : > { %p1313_p0 = scmp.ne.s32.totalorder %s1311_s9, %s1312_s12  ;;  %p1318_p6 = scmp.lt.s32.totalorder %s1316_s27, %s1312_s12 }
 0x59b   : > { %p1314_p2 = pnand %p1313_p0, %p1579_p7  ;;  %p1319_p8 = por %p1318_p6, %p1317_p5 }
 0x59d   : > { %p1315_p4 = pneg %p1314_p2 }
 0x59f   : > { %p1320_p10 = pnand %p1319_p8, %p1315_p4 }
 0x5a1   : > { %1323 = shalt.err (!%p1320_p10)
}
 0x5a2   : > { %1022 = dma.vmem_to_hbm [thread:$0]  (%p1579_p7), %s850_s11, 128, %s852_s30, %s837_s17  }
 0x5a3 PF: > { %s1859_s4 = sld [smem:[#allocation16_spill]]  ;;  %p1049_p12 = scmp.ge.s32.totalorder %s1426_s13, 2 }
 0x5a5   : > { %p1039_p13 = pnand %p1049_p12, %p1584_p9 }
 0x5a7   : > { %p1040_p11 = pneg %p1039_p13 }
 0x5a9   : > { %s863_s6 = sand.u32 1, %s1859_s4  }
 0x5aa   : > { %s864_s19 = scalar_lea.sflag [#allocation5], %s863_s6 }
 0x5ab   : > { %1381 = dma.done.wait (%p1040_p11), %s864_s19, 128  }
 0x5ac   : > { %1383 = vsyncadd (%p1040_p11), %s864_s19, 4294967168  ;;  %s30_s13 = sadd.s32 1, %s1426_s13   ;;  %s1861_s28 = sld [smem:[#allocation17_spill]] }
 0x5ad   : > { %p27_p3 = scmp.ge.s32.totalorder %s30_s13, 8   ;;  %s1862_s8 = sld [smem:[#allocation20_spill]] }
 0x5ae   : > { %s1863_s30 = sld [smem:[#allocation21_spill]]  ;;  %s1864_s21 = smov %s1390_s22 }
 0x5af   : > { %s1865_s22 = smov %s1394_s23  ;;  %s1866_s23 = smov %s1652_s24 }
 0x5b0   : > { %s1867_s24 = smov %s1402_s25  ;;  %s1868_s25 = smov %s1406_s26 }
 0x5b1   : > { %s1869_s26 = smov %s1644_s7  ;;  %s1870_s27 = smov %s1418_s29 }
 0x5b2   :  { %29 = sbr.rel (!%p27_p3) target bundleno = 22 (0x16), region = 136 }
 0x5b3   : > { %s1871_s29 = smov %s1862_s8 }
 0x5b7   :  { %870 = vsyncpa [#allocation4], 1 }
 0x5b8   :  { %872 = vsyncpa [#allocation4 + $0x1], 1 }
 0x5b9   :  { %873 = vsyncpa [#allocation7], 1 }
 0x5ba   :  { %874 = vsyncpa [#allocation10], 1 }
 0x5bb   :  { %875 = vsyncpa [#allocation5], 1 }
 0x5bc   :  { %877 = vsyncpa [#allocation5 + $0x1], 1 }

</bundles_post_ra>
